<compile_context>
chip_gen: v6e
topology: v6e:2x2x1
jax: 0.10.0
libtpu: 0.0.40
codegen_flags: <defaults>
</compile_context>

<pallas_src>
import functools
import math

import jax
import jax.numpy as jnp
from jax.experimental import pallas as pl
from jax.experimental.pallas import tpu as pltpu


# ----------------------------------------------------------------------------- kernel


def _cross_attention_kernel(q_ref, k_ref, v_ref, o_ref, m_sc, l_sc, acc_sc,
                            *, mxu_dtype):
    # q_ref: (bb, hh, S, D); k_ref/v_ref: (bb, hh, kvb, D); o_ref: (bb, S, hh*D)
    bb, hh, s, d = q_ref.shape
    kvb = k_ref.shape[2]
    n = bb * hh
    kv_step = pl.program_id(2)

    @pl.when(kv_step == 0)
    def _init():
        m_sc[...] = jnp.full(m_sc.shape, -jnp.inf, m_sc.dtype)
        l_sc[...] = jnp.zeros(l_sc.shape, l_sc.dtype)
        acc_sc[...] = jnp.zeros(acc_sc.shape, acc_sc.dtype)

    # Collapse (bb, hh) -> N: leading-dim reshape, a layout no-op in VMEM.
    q = q_ref[...].reshape(n, s, d)
    k = k_ref[...].reshape(n, kvb, d)
    v = v_ref[...].reshape(n, kvb, d)
    if mxu_dtype is not None:
        # bf16 MXU feeds (3-6x matmul throughput for f32 inputs); accumulation
        # below is still requested in f32.
        q = q.astype(mxu_dtype)
        k = k.astype(mxu_dtype)
        v = v.astype(mxu_dtype)

    # scores = (Q / sqrt(d)) @ K^T.  Scale is applied to the small (S, D)
    # operand (not the (S, kvb) block); K's last dim is contracted directly
    # (no explicit transpose); f32 accumulation on the MXU.
    scale = jnp.asarray(1.0 / math.sqrt(d), q.dtype)
    scores = jnp.einsum("nqd,nkd->nqk", q * scale, k,
                        preferred_element_type=jnp.float32)

    # Online (flash-style) softmax update, all statistics in f32.
    m_prev = m_sc[...]
    m_new = jnp.maximum(m_prev, jnp.max(scores, axis=-1, keepdims=True))
    alpha = jnp.exp(m_prev - m_new)
    p = jnp.exp(scores - m_new)
    l_sc[...] = alpha * l_sc[...] + jnp.sum(p, axis=-1, keepdims=True)
    acc_sc[...] = alpha * acc_sc[...] + jnp.einsum(
        "nqk,nkd->nqd", p.astype(v.dtype), v,
        preferred_element_type=jnp.float32)
    m_sc[...] = m_new

    @pl.when(kv_step == pl.num_programs(2) - 1)
    def _finalize():
        # approx reciprocal runs on the EUP (its own VLIW slot); one Newton
        # step on the tiny (N, S, 1) denominator restores ~f32 accuracy.
        denom = l_sc[...]
        r = pl.reciprocal(denom, approx=True)
        r = r * (2.0 - denom * r)
        ctx = (acc_sc[...] * r).reshape(bb, hh, s, d)
        # Pack the heads along lanes in registers and issue a single
        # lane-dense full-width store (hh*D is a multiple of 128 whenever the
        # tile chooser can arrange it) instead of hh masked sub-128-lane
        # stores.  Lane order h*D:(h+1)*D matches the (B, S, H, D) reshape.
        packed = jnp.concatenate([ctx[:, h] for h in range(hh)], axis=-1)
        o_ref[...] = packed.astype(o_ref.dtype)


# ------------------------------------------------------------------------ tile sizing


def _vmem_capacity_bytes():
    """Physical VMEM per core; conservative (v7x-sized) fallback on failure."""
    try:
        info = pltpu.get_tpu_info()
        cap = getattr(info, "vmem_capacity_bytes", None)
        if cap:
            return int(cap)
    except Exception:
        pass
    return 64 * 1024 * 1024


def _footprint(bb, hh, S, D, kvb, itemsize):
    """Rough per-grid-step VMEM bytes (double-buffered I/O + f32 intermediates)."""
    n = bb * hh
    q_bytes = 2 * n * S * D * itemsize           # q block (double-buffered)
    kv_bytes = 2 * 2 * n * kvb * D * itemsize    # k + v blocks (double-buffered)
    out_bytes = 2 * bb * S * hh * D * itemsize   # output block (double-buffered)
    scratch = n * S * D * 4 + 4 * n * S * 4      # f32 acc + m/l scratch
    inter = 3 * n * S * kvb * 4                  # f32 scores / probs / temporaries
    return q_bytes + kv_bytes + out_bytes + scratch + inter


def _choose_tiles(B, H, S, D, itemsize, budget_bytes, prefer_multi_step):
    """Pick (batch_block, head_block, kv_block) divisors that fit the VMEM budget."""
    # Head blocks must keep the output lane-dense: hh*D % 128 == 0, or hh == H
    # (full-dim blocks are always legal).
    hh_cands = [c for c in range(1, H + 1)
                if H % c == 0 and ((c * D) % 128 == 0 or c == H)]
    hh_min = min(hh_cands)

    # KV blocks: full S first, then 128-multiple divisors, then 8-multiples.
    divs8 = [c for c in range(8, S, 8) if S % c == 0]
    kv_cands = ([S]
                + sorted([c for c in divs8 if c % 128 == 0], reverse=True)
                + sorted([c for c in divs8 if c % 128 != 0], reverse=True))
    kvb = kv_cands[-1]
    for c in kv_cands:
        if _footprint(1, hh_min, S, D, c, itemsize) <= budget_bytes:
            kvb = c
            break

    hh_fit = [c for c in hh_cands
              if _footprint(1, c, S, D, kvb, itemsize) <= budget_bytes]
    hh = max(hh_fit) if hh_fit else hh_min

    bb_fit = [c for c in range(1, B + 1)
              if B % c == 0 and _footprint(c, hh, S, D, kvb, itemsize) <= budget_bytes]
    bb = max(bb_fit) if bb_fit else 1

    # On 2-TensorCore (v7x-class) parts keep >= 2 parallel grid steps so the
    # batch/head axes can be sharded across cores; skipped on v5e/v6e.
    if prefer_multi_step and (B // bb) * (H // hh) < 2:
        if bb > 1:
            bb = max(c for c in range(1, bb) if B % c == 0)
        else:
            smaller = [c for c in hh_cands if c < hh and
                       _footprint(1, c, S, D, kvb, itemsize) <= budget_bytes]
            if smaller:
                hh = max(smaller)
    return bb, hh, kvb


# ----------------------------------------------------------------------------- wrapper


def cross_attention(query_layer, key_layer, value_layer, *,
                    batch_block=None, head_block=None, kv_block=None,
                    mxu_dtype=None):
    """Pallas implementation of CrossAttention.forward.

    Args:
      query_layer, key_layer, value_layer: (B, H, S, D) arrays.
      batch_block / head_block / kv_block: optional tiling overrides.
      mxu_dtype: optional dtype (e.g. jnp.bfloat16) to feed the MXU with; the
        accumulation stays f32.
    Returns:
      context_layer: (B, S, H, D) -- matches torch permute(0, 2, 1, 3).
    """
    B, H, S, D = query_layer.shape
    itemsize = jnp.dtype(query_layer.dtype).itemsize

    # Generation-aware VMEM budgeting (v5e/v6e: 128 MiB physical; v7x: 64 MiB).
    cap = _vmem_capacity_bytes()
    headroom = 12 * 1024 * 1024
    vmem_limit = int(max(32 * 1024 * 1024, min(cap - headroom, 112 * 1024 * 1024)))
    budget = vmem_limit - 8 * 1024 * 1024        # slack for compiler scratch
    two_core_part = cap <= 80 * 1024 * 1024      # 64 MiB VMEM => v7x-class, 2 TCs

    auto_bb, auto_hh, auto_kvb = _choose_tiles(
        B, H, S, D, itemsize, budget, prefer_multi_step=two_core_part)
    bb = auto_bb if batch_block is None else int(batch_block)
    hh = auto_hh if head_block is None else int(head_block)
    kvb = auto_kvb if kv_block is None else int(kv_block)

    if B % bb or H % hh or S % kvb:
        raise ValueError(f"tile overrides must divide the shape: "
                         f"B={B}%{bb}, H={H}%{hh}, S={S}%{kvb}")
    if (hh * D) % 128 and hh != H:
        raise ValueError("head_block*D must be a multiple of 128 (or head_block == H)")
    if kvb % 8 and kvb != S:
        raise ValueError("kv_block must be a multiple of 8 (or kv_block == S)")

    grid = (B // bb, H // hh, S // kvb)

    q_spec = pl.BlockSpec((bb, hh, S, D), lambda i, j, k: (i, j, 0, 0))
    kv_spec = pl.BlockSpec((bb, hh, kvb, D), lambda i, j, k: (i, j, k, 0))
    out_spec = pl.BlockSpec((bb, S, hh * D), lambda i, j, k: (i, 0, j))

    kernel = functools.partial(_cross_attention_kernel, mxu_dtype=mxu_dtype)

    cost = pl.CostEstimate(
        flops=4 * B * H * S * S * D,
        transcendentals=B * H * S * S,
        bytes_accessed=4 * B * H * S * D * itemsize,
    )

    out = pl.pallas_call(
        kernel,
        out_shape=jax.ShapeDtypeStruct((B, S, H * D), query_layer.dtype),
        grid_spec=pltpu.PrefetchScalarGridSpec(
            num_scalar_prefetch=0,
            grid=grid,
            in_specs=[q_spec, kv_spec, kv_spec],
            out_specs=out_spec,
            scratch_shapes=[
                pltpu.VMEM((bb * hh, S, 1), jnp.float32),   # running max m
                pltpu.VMEM((bb * hh, S, 1), jnp.float32),   # running denom l
                pltpu.VMEM((bb * hh, S, D), jnp.float32),   # running context acc
            ],
        ),
        compiler_params=pltpu.CompilerParams(
            dimension_semantics=("parallel", "parallel", "arbitrary"),
            vmem_limit_bytes=vmem_limit,
        ),
        cost_estimate=cost,
    )(query_layer, key_layer, value_layer)

    # (B, S, H*D) -> (B, S, H, D): contiguous reshape, free metadata op.
    return out.reshape(B, S, H, D)


# ---------------------------------------------------------------------------- reference


def _reference(query_layer, key_layer, value_layer):
    d_k = query_layer.shape[-1]
    scores = jnp.matmul(
        query_layer / math.sqrt(d_k), jnp.swapaxes(key_layer, -1, -2))
    probs = jax.nn.softmax(scores, axis=-1)
    ctx = jnp.matmul(probs, value_layer)
    return jnp.transpose(ctx, (0, 2, 1, 3))


if __name__ == "__main__":
    # Small shapes consistent with the module: H * D = all_head_size = 128.
    B, H, S, D = 2, 4, 8, 32
    key = jax.random.PRNGKey(0)
    kq, kk, kv = jax.random.split(key, 3)
    q = jax.random.normal(kq, (B, H, S, D), dtype=jnp.float32)
    k = jax.random.normal(kk, (B, H, S, D), dtype=jnp.float32)
    v = jax.random.normal(kv, (B, H, S, D), dtype=jnp.float32)

    out = cross_attention(q, k, v)
    jax.block_until_ready(out)
    ref = _reference(q, k, v)
    assert out.shape == (B, S, H, D), out.shape
    assert jnp.allclose(out, ref, atol=1e-3, rtol=1e-3), "mismatch vs reference (f32)"

    # Exercise the head-tiled + KV-tiled (flash) path explicitly.
    B2, H2, S2, D2 = 2, 8, 128, 32
    k2q, k2k, k2v = jax.random.split(jax.random.PRNGKey(1), 3)
    q2 = jax.random.normal(k2q, (B2, H2, S2, D2), dtype=jnp.float32)
    k2 = jax.random.normal(k2k, (B2, H2, S2, D2), dtype=jnp.float32)
    v2 = jax.random.normal(k2v, (B2, H2, S2, D2), dtype=jnp.float32)
    out2 = cross_attention(q2, k2, v2, batch_block=1, head_block=4, kv_block=32)
    jax.block_until_ready(out2)
    ref2 = _reference(q2, k2, v2)
    assert out2.shape == (B2, S2, H2, D2), out2.shape
    assert jnp.allclose(out2, ref2, atol=1e-3, rtol=1e-3), "mismatch vs reference (tiled)"

    # bf16 MXU feeds for f32 inputs (f32 accumulation): compare against the
    # reference evaluated on bf16-rounded inputs (the standard accuracy tradeoff).
    out3 = cross_attention(q, k, v, mxu_dtype=jnp.bfloat16)
    jax.block_until_ready(out3)
    ref_bf = _reference(q.astype(jnp.bfloat16).astype(jnp.float32),
                        k.astype(jnp.bfloat16).astype(jnp.float32),
                        v.astype(jnp.bfloat16).astype(jnp.float32))
    assert jnp.allclose(out3, ref_bf, atol=5e-2, rtol=5e-2), \
        "mismatch vs reference (bf16 MXU feeds)"

    print("KERNEL_OK")
</pallas_src>

<mosaic_0001>
module attributes {stable_mosaic.version = 11 : i64} {
  func.func @_cross_attention_kernel(%arg0: i32, %arg1: i32, %arg2: i32, %arg3: memref<1x4x8x32xf32, #tpu.memory_space<vmem>>, %arg4: memref<1x4x8x32xf32, #tpu.memory_space<vmem>>, %arg5: memref<1x4x8x32xf32, #tpu.memory_space<vmem>>, %arg6: memref<1x8x128xf32, #tpu.memory_space<vmem>>, %arg7: memref<4x8x1xf32, #tpu.memory_space<vmem>>, %arg8: memref<4x8x1xf32, #tpu.memory_space<vmem>>, %arg9: memref<4x8x32xf32, #tpu.memory_space<vmem>>) attributes {dimension_semantics = [#tpu.dimension_semantics<parallel>, #tpu.dimension_semantics<parallel>, #tpu.dimension_semantics<arbitrary>], iteration_bounds = array<i64: 2, 1, 1>, scalar_prefetch = 0 : i64, scratch_operands = 3 : i64, tpu.core_type = #tpu.core_type<tc>, window_params = [{transform_indices = @transform_0, window_bounds = array<i64: 1, 4, 8, 32>}, {transform_indices = @transform_1, window_bounds = array<i64: 1, 4, 8, 32>}, {transform_indices = @transform_2, window_bounds = array<i64: 1, 4, 8, 32>}, {transform_indices = @transform_3, window_bounds = array<i64: 1, 8, 128>}]} {
    %c0_i32 = arith.constant 0 : i32
    %0 = arith.cmpi eq, %arg2, %c0_i32 : i32
    %1 = arith.extui %0 : i1 to i32
    %c0_i32_0 = arith.constant 0 : i32
    %2 = arith.cmpi ne, %1, %c0_i32_0 : i32
    scf.if %2 {
      %cst_36 = arith.constant 0xFF800000 : f32
      %37 = vector.broadcast %cst_36 : f32 to vector<4x8x1xf32>
      %c0_37 = arith.constant 0 : index
      %c0_38 = arith.constant 0 : index
      %c0_39 = arith.constant 0 : index
      %38 = vector.load %arg7[%c0_37, %c0_38, %c0_39] : memref<4x8x1xf32, #tpu.memory_space<vmem>>, vector<4x8x1xf32>
      tpu.vector_store %arg7[%c0_37, %c0_38, %c0_39], %37 {strides = array<i32>} : memref<4x8x1xf32, #tpu.memory_space<vmem>>, vector<4x8x1xf32>,
      %cst_40 = arith.constant 0.000000e+00 : f32
      %39 = vector.broadcast %cst_40 : f32 to vector<4x8x1xf32>
      %c0_41 = arith.constant 0 : index
      %c0_42 = arith.constant 0 : index
      %c0_43 = arith.constant 0 : index
      %40 = vector.load %arg8[%c0_41, %c0_42, %c0_43] : memref<4x8x1xf32, #tpu.memory_space<vmem>>, vector<4x8x1xf32>
      tpu.vector_store %arg8[%c0_41, %c0_42, %c0_43], %39 {strides = array<i32>} : memref<4x8x1xf32, #tpu.memory_space<vmem>>, vector<4x8x1xf32>,
      %cst_44 = arith.constant 0.000000e+00 : f32
      %41 = vector.broadcast %cst_44 : f32 to vector<4x8x32xf32>
      %c0_45 = arith.constant 0 : index
      %c0_46 = arith.constant 0 : index
      %c0_47 = arith.constant 0 : index
      %42 = vector.load %arg9[%c0_45, %c0_46, %c0_47] : memref<4x8x32xf32, #tpu.memory_space<vmem>>, vector<4x8x32xf32>
      tpu.vector_store %arg9[%c0_45, %c0_46, %c0_47], %41 {strides = array<i32>} : memref<4x8x32xf32, #tpu.memory_space<vmem>>, vector<4x8x32xf32>,
    } else {
    }
    %c0 = arith.constant 0 : index
    %c0_1 = arith.constant 0 : index
    %c0_2 = arith.constant 0 : index
    %c0_3 = arith.constant 0 : index
    %3 = vector.load %arg3[%c0, %c0_1, %c0_2, %c0_3] : memref<1x4x8x32xf32, #tpu.memory_space<vmem>>, vector<1x4x8x32xf32>
    %4 = vector.shape_cast %3 : vector<1x4x8x32xf32> to vector<4x8x32xf32>
    %c0_4 = arith.constant 0 : index
    %c0_5 = arith.constant 0 : index
    %c0_6 = arith.constant 0 : index
    %c0_7 = arith.constant 0 : index
    %5 = vector.load %arg4[%c0_4, %c0_5, %c0_6, %c0_7] : memref<1x4x8x32xf32, #tpu.memory_space<vmem>>, vector<1x4x8x32xf32>
    %6 = vector.shape_cast %5 : vector<1x4x8x32xf32> to vector<4x8x32xf32>
    %c0_8 = arith.constant 0 : index
    %c0_9 = arith.constant 0 : index
    %c0_10 = arith.constant 0 : index
    %c0_11 = arith.constant 0 : index
    %7 = vector.load %arg5[%c0_8, %c0_9, %c0_10, %c0_11] : memref<1x4x8x32xf32, #tpu.memory_space<vmem>>, vector<1x4x8x32xf32>
    %8 = vector.shape_cast %7 : vector<1x4x8x32xf32> to vector<4x8x32xf32>
    %cst = arith.constant 0.176776692 : f32
    %9 = vector.broadcast %cst : f32 to vector<4x8x32xf32>
    %10 = arith.mulf %4, %9 : vector<4x8x32xf32>
    "tpu.trace_start"() <{level = 10 : i32, message = "nqd,nkd->nqk"}> : () -> ()
    %cst_12 = arith.constant dense<0.000000e+00> : vector<4x8x8xf32>
    %11 = tpu.matmul %10, %6, %cst_12 {dimension_numbers = #tpu.dot_dimension_numbers<[2], [2], [1], [1], [0, 0, 0, 1, 1, 1], [0], [0]>} : vector<4x8x32xf32>, vector<4x8x32xf32>, vector<4x8x8xf32> -> vector<4x8x8xf32>
    "tpu.trace_stop"() : () -> ()
    %c0_13 = arith.constant 0 : index
    %c0_14 = arith.constant 0 : index
    %c0_15 = arith.constant 0 : index
    %12 = vector.load %arg7[%c0_13, %c0_14, %c0_15] : memref<4x8x1xf32, #tpu.memory_space<vmem>>, vector<4x8x1xf32>
    %cst_16 = arith.constant dense<0xFF800000> : vector<4x8xf32>
    %13 = vector.multi_reduction <maximumf>, %11, %cst_16 [2] : vector<4x8x8xf32> to vector<4x8xf32>
    %14 = vector.shape_cast %13 : vector<4x8xf32> to vector<4x8x1xf32>
    %15 = arith.maximumf %12, %14 : vector<4x8x1xf32>
    %16 = arith.subf %12, %15 : vector<4x8x1xf32>
    %17 = math.exp %16 : vector<4x8x1xf32>
    %18 = vector.broadcast %15 : vector<4x8x1xf32> to vector<4x8x8xf32>
    %19 = arith.subf %11, %18 : vector<4x8x8xf32>
    %20 = math.exp %19 : vector<4x8x8xf32>
    %c0_17 = arith.constant 0 : index
    %c0_18 = arith.constant 0 : index
    %c0_19 = arith.constant 0 : index
    %21 = vector.load %arg8[%c0_17, %c0_18, %c0_19] : memref<4x8x1xf32, #tpu.memory_space<vmem>>, vector<4x8x1xf32>
    %22 = arith.mulf %17, %21 : vector<4x8x1xf32>
    %cst_20 = arith.constant dense<0.000000e+00> : vector<4x8xf32>
    %23 = vector.multi_reduction <add>, %20, %cst_20 [2] : vector<4x8x8xf32> to vector<4x8xf32>
    %24 = vector.shape_cast %23 : vector<4x8xf32> to vector<4x8x1xf32>
    %25 = arith.addf %22, %24 : vector<4x8x1xf32>
    %c0_21 = arith.constant 0 : index
    %c0_22 = arith.constant 0 : index
    %c0_23 = arith.constant 0 : index
    %26 = vector.load %arg8[%c0_21, %c0_22, %c0_23] : memref<4x8x1xf32, #tpu.memory_space<vmem>>, vector<4x8x1xf32>
    tpu.vector_store %arg8[%c0_21, %c0_22, %c0_23], %25 {strides = array<i32>} : memref<4x8x1xf32, #tpu.memory_space<vmem>>, vector<4x8x1xf32>,
    %c0_24 = arith.constant 0 : index
    %c0_25 = arith.constant 0 : index
    %c0_26 = arith.constant 0 : index
    %27 = vector.load %arg9[%c0_24, %c0_25, %c0_26] : memref<4x8x32xf32, #tpu.memory_space<vmem>>, vector<4x8x32xf32>
    %28 = vector.broadcast %17 : vector<4x8x1xf32> to vector<4x8x32xf32>
    %29 = arith.mulf %28, %27 : vector<4x8x32xf32>
    "tpu.trace_start"() <{level = 10 : i32, message = "nqk,nkd->nqd"}> : () -> ()
    %cst_27 = arith.constant dense<0.000000e+00> : vector<4x8x32xf32>
    %30 = tpu.matmul %20, %8, %cst_27 {dimension_numbers = #tpu.dot_dimension_numbers<[2], [1], [1], [2], [0, 0, 0, 1, 1, 2], [0], [0]>} : vector<4x8x8xf32>, vector<4x8x32xf32>, vector<4x8x32xf32> -> vector<4x8x32xf32>
    "tpu.trace_stop"() : () -> ()
    %31 = arith.addf %29, %30 : vector<4x8x32xf32>
    %c0_28 = arith.constant 0 : index
    %c0_29 = arith.constant 0 : index
    %c0_30 = arith.constant 0 : index
    %32 = vector.load %arg9[%c0_28, %c0_29, %c0_30] : memref<4x8x32xf32, #tpu.memory_space<vmem>>, vector<4x8x32xf32>
    tpu.vector_store %arg9[%c0_28, %c0_29, %c0_30], %31 {strides = array<i32>} : memref<4x8x32xf32, #tpu.memory_space<vmem>>, vector<4x8x32xf32>,
    %c0_31 = arith.constant 0 : index
    %c0_32 = arith.constant 0 : index
    %c0_33 = arith.constant 0 : index
    %33 = vector.load %arg7[%c0_31, %c0_32, %c0_33] : memref<4x8x1xf32, #tpu.memory_space<vmem>>, vector<4x8x1xf32>
    tpu.vector_store %arg7[%c0_31, %c0_32, %c0_33], %15 {strides = array<i32>} : memref<4x8x1xf32, #tpu.memory_space<vmem>>, vector<4x8x1xf32>,
    %c0_i32_34 = arith.constant 0 : i32
    %34 = arith.cmpi eq, %arg2, %c0_i32_34 : i32
    %35 = arith.extui %34 : i1 to i32
    %c0_i32_35 = arith.constant 0 : i32
    %36 = arith.cmpi ne, %35, %c0_i32_35 : i32
    scf.if %36 {
      %c0_36 = arith.constant 0 : index
      %c0_37 = arith.constant 0 : index
      %c0_38 = arith.constant 0 : index
      %37 = vector.load %arg8[%c0_36, %c0_37, %c0_38] : memref<4x8x1xf32, #tpu.memory_space<vmem>>, vector<4x8x1xf32>
      %38 = tpu.reciprocal %37 {approx = true} : vector<4x8x1xf32> -> vector<4x8x1xf32>
      %39 = arith.mulf %37, %38 : vector<4x8x1xf32>
      %cst_39 = arith.constant 2.000000e+00 : f32
      %40 = vector.broadcast %cst_39 : f32 to vector<4x8x1xf32>
      %41 = arith.subf %40, %39 : vector<4x8x1xf32>
      %42 = arith.mulf %38, %41 : vector<4x8x1xf32>
      %c0_40 = arith.constant 0 : index
      %c0_41 = arith.constant 0 : index
      %c0_42 = arith.constant 0 : index
      %43 = vector.load %arg9[%c0_40, %c0_41, %c0_42] : memref<4x8x32xf32, #tpu.memory_space<vmem>>, vector<4x8x32xf32>
      %44 = vector.broadcast %42 : vector<4x8x1xf32> to vector<4x8x32xf32>
      %45 = arith.mulf %43, %44 : vector<4x8x32xf32>
      %46 = vector.shape_cast %45 : vector<4x8x32xf32> to vector<1x4x8x32xf32>
      %47 = vector.extract_strided_slice %46 {offsets = [0, 0, 0, 0], sizes = [1, 1, 8, 32], strides = [1, 1, 1, 1]} : vector<1x4x8x32xf32> to vector<1x1x8x32xf32>
      %48 = vector.shape_cast %47 : vector<1x1x8x32xf32> to vector<1x8x32xf32>
      %49 = vector.extract_strided_slice %46 {offsets = [0, 1, 0, 0], sizes = [1, 1, 8, 32], strides = [1, 1, 1, 1]} : vector<1x4x8x32xf32> to vector<1x1x8x32xf32>
      %50 = vector.shape_cast %49 : vector<1x1x8x32xf32> to vector<1x8x32xf32>
      %51 = vector.extract_strided_slice %46 {offsets = [0, 2, 0, 0], sizes = [1, 1, 8, 32], strides = [1, 1, 1, 1]} : vector<1x4x8x32xf32> to vector<1x1x8x32xf32>
      %52 = vector.shape_cast %51 : vector<1x1x8x32xf32> to vector<1x8x32xf32>
      %53 = vector.extract_strided_slice %46 {offsets = [0, 3, 0, 0], sizes = [1, 1, 8, 32], strides = [1, 1, 1, 1]} : vector<1x4x8x32xf32> to vector<1x1x8x32xf32>
      %54 = vector.shape_cast %53 : vector<1x1x8x32xf32> to vector<1x8x32xf32>
      %55 = tpu.concatenate %48, %50, %52, %54 in 2 : vector<1x8x32xf32>, vector<1x8x32xf32>, vector<1x8x32xf32>, vector<1x8x32xf32> -> vector<1x8x128xf32>
      %c0_43 = arith.constant 0 : index
      %c0_44 = arith.constant 0 : index
      %c0_45 = arith.constant 0 : index
      %56 = vector.load %arg6[%c0_43, %c0_44, %c0_45] : memref<1x8x128xf32, #tpu.memory_space<vmem>>, vector<1x8x128xf32>
      tpu.vector_store %arg6[%c0_43, %c0_44, %c0_45], %55 {strides = array<i32>} : memref<1x8x128xf32, #tpu.memory_space<vmem>>, vector<1x8x128xf32>,
    } else {
    }
    return
  }
  func.func @transform_0(%arg0: i32, %arg1: i32, %arg2: i32) -> (i32, i32, i32, i32) {
    %c0_i32 = arith.constant 0 : i32
    %c0_i32_0 = arith.constant 0 : i32
    %c0_i32_1 = arith.constant 0 : i32
    return %arg0, %arg1, %c0_i32, %c0_i32_0 : i32, i32, i32, i32
  }
  func.func @transform_1(%arg0: i32, %arg1: i32, %arg2: i32) -> (i32, i32, i32, i32) {
    %c0_i32 = arith.constant 0 : i32
    %c0_i32_0 = arith.constant 0 : i32
    return %arg0, %arg1, %arg2, %c0_i32 : i32, i32, i32, i32
  }
  func.func @transform_2(%arg0: i32, %arg1: i32, %arg2: i32) -> (i32, i32, i32, i32) {
    %c0_i32 = arith.constant 0 : i32
    %c0_i32_0 = arith.constant 0 : i32
    return %arg0, %arg1, %arg2, %c0_i32 : i32, i32, i32, i32
  }
  func.func @transform_3(%arg0: i32, %arg1: i32, %arg2: i32) -> (i32, i32, i32) {
    %c0_i32 = arith.constant 0 : i32
    %c0_i32_0 = arith.constant 0 : i32
    return %arg0, %c0_i32, %arg1 : i32, i32, i32
  }
}

</mosaic_0001>

<bundles_post_ra>
// kernel: tpu_custom_call.1
= control target key start
LH: loop header
LB: loop body
LE: loop exit
PB: predicated region body
PF: predicated region fallthrough
CT: control target
= control target key end

     0   :  { %s2008_s0 = inlined_call_operand.hbm [shape: f32[2,4,8,32], index: 0, kind: input, shape index: {}]   ;;  %s2009_s1 = inlined_call_operand.hbm [shape: f32[2,4,8,32], index: 1, kind: input, shape index: {}]   ;;  %s2010_s2 = inlined_call_operand.hbm [shape: f32[2,4,8,32], index: 2, kind: input, shape index: {}]   ;;  %s2011_s3 = inlined_call_operand.hbm [shape: f32[2,8,128], index: 3, kind: output, shape index: {}]  }
   0x1   :  { %2017 = sst [smem:[#allocation18_spill]] %s2009_s1 }
   0x2   :  { %8 = vsyncpa [#allocation6], 0 }
   0x3   :  { %10 = vsyncpa [#allocation6 + $0x1], 0 }
   0x4   :  { %11 = vsyncpa [#allocation9], 0 }
   0x5   :  { %13 = vsyncpa [#allocation9 + $0x1], 0 }
   0x6   :  { %14 = vsyncpa [#allocation7], 0 }
   0x7   :  { %16 = vsyncpa [#allocation7 + $0x1], 0  ;;  %s1696_s12 = smov 0   ;;  %s1698_s13 = smov 0  }
   0x8   :  { %s1700_s14 = smov 0   ;;  %s1702_s15 = smov 0  }
   0x9   :  { %s1704_s16 = smov 0   ;;  %s1706_s17 = smov 0  }
   0xa LB: > { %2018 = sst [smem:[#allocation15_spill]] %s1657_s16  ;;  %s1727_s18 = sadd.s32 4294967295, %s1661_s17   ;;  %s1661_s17 = sphi %s1706_s17, %s22_s17   ;;  %s1657_s16 = sphi %s1704_s16, %s2033_s16   ;;  %s1653_s15 = sphi %s1702_s15, %s2032_s15   ;;  %s1649_s14 = sphi %s1700_s14, %s2036_s14   ;;  %s1645_s13 = sphi %s1698_s13, %s2035_s13   ;;  %s1641_s12 = sphi %s1696_s12, %s2034_s12  }
   0xb   : > { %s1294_s19 = sadd.s32 4294967294, %s1661_s17   ;;  %s41_s20 = sadd.s32 1, %s1657_s16 }
   0xc   : > { %s50_s21 = sadd.s32 1, %s1649_s14  ;;  %p43_p0 = scmp.ge.s32.totalorder %s41_s20, 2 }
   0xd   : > { %p57_p1 = scmp.ne.s32.totalorder %s1649_s14, %s1645_s13  ;;  %p58_p2 = scmp.eq.s32.totalorder %s1661_s17, 0 }
   0xe   : > { %p63_p3 = scmp.ne.s32.totalorder %s1645_s13, %s1641_s12  ;;  %s2038_s20 = smov (%p43_p0, %s41_s20), 0 }
   0xf   : > { %2019 = sst [smem:[#allocation16_spill]] %s2038_s20  ;;  %p1739_p4 = por %p58_p2, %p57_p1 }
  0x10   : > { %p64_p5 = scmp.eq.s32.totalorder %s1727_s18, 0  ;;  %s45_s23 = ssub.s32 %s1657_s16, %s2038_s20 }
  0x11   : > { %p149_p6 = scmp.eq.s32.totalorder %s1727_s18, 1  ;;  %p48_p7 = scmp.eq.s32.totalorder %s45_s23, 0 }
  0x12   : > { %p1747_p8 = por %p64_p5, %p63_p3  ;;  %p155_p10 = scmp.eq.s32.totalorder %s1294_s19, 1 }
  0x13   : > { %p1751_p9 = por %p149_p6, %p57_p1  ;;  %p1408_p13 = scmp.lt.s32.totalorder %s1661_s17, 2 }
  0x14   : > { %s1756_s26 = scalar_select %p48_p7, %s1649_s14, %s50_s21  }
  0x15   : > { %p1758_p11 = por %p155_p10, %p63_p3  ;;  %s2012_s28 = sand.u32 1, %s1649_s14  }
  0x16   : > { %2023 = sst [smem:[#allocation17_spill]] %s1756_s26  ;;  %s1767_s29 = sshll.u32 %s2012_s28, 5 }
  0x17   : > { %s1770_s30 = sshll.u32 %s1657_s16, 9  ;;  %p1774_p0 = pnand %p1408_p13, %p1739_p4 }
  0x18   : > { %s198_s5 = sand.u32 1, %s1661_s17   ;;  %s2026_s1 = sld [smem:[#allocation18_spill]] }
  0x19   : > { %s202_s9 = scalar_lea.vmem [#allocation8], %s1767_s29  ;;  %p1306_p1 = scmp.ge.s32.totalorder %s1661_s17, 1 }
  0x1a   : > { %s212_s10 = sshll.u32 %s202_s9, 4  ;;  %p244_p2 = scmp.lt.s32.totalorder %s1661_s17, 3  ;;  %s213_s10 = int_to_ptr.vmem [resolvable:$true] %s212_s10 }
  0x1b   : > { %s1786_s11 = scalar_lea.sflag [#allocation9], %s198_s5  ;;  %p1495_p3 = pneg %p1774_p0 }
  0x1c   : > { %s1506_s19 = scalar_lea.vmem %s213_s10, 512  ;;  %s1663_s21 = smov [#allocation8]  }
  0x1d   : > { %p1507_p4 = scmp.ne.s32.totalorder %s213_s10, %s1506_s19  ;;  %s1511_s22 = sshll.u32 %s1663_s21, 4  ;;  %s1512_s22 = int_to_ptr.vmem [resolvable:$false] %s1511_s22 }
  0x1e   : > { %s211_s8 = scalar_lea.hbm %s2026_s1, %s1770_s30  ;;  %s1513_s23 = scalar_lea.vmem %s1512_s22, 1024 }
  0x1f   : > { %p1509_p5 = pnand %p1507_p4, %p1495_p3  ;;  %p1514_p7 = scmp.lt.s32.totalorder %s213_s10, %s1512_s22 }
  0x20   : > { %p1515_p10 = scmp.lt.s32.totalorder %s1513_s23, %s1506_s19 }
  0x21   : > { %p1510_p6 = pneg %p1509_p5 }
  0x22   : > { %p1516_p13 = por %p1515_p10, %p1514_p7 }
  0x24   : > { %p1517_p12 = pnand %p1516_p13, %p1510_p6 }
  0x26   : > { %1520 = shalt.err (!%p1517_p12)
}
  0x27   : > { %s2015_s6 = smov 128   ;;  %s1665_s5 = smov 8  }
  0x28   : > { %1400 = dma.hbm_to_vmem [thread:$0]  (!%p1774_p0), %s211_s8, 512, %s213_s10, %s1786_s11, %s2015_s6, %s2015_s6, %s1665_s5  }
  0x29   : > { %p1803_p4 = pnand %p1306_p1, %p244_p2  ;;  %s187_s21 = scalar_lea.hbm %s2008_s0, %s1770_s30 }
  0x2a   : > { %s179_s22 = scalar_lea.vmem [#allocation5], %s1767_s29  ;;  %s235_s20 = scalar_lea.hbm %s2010_s2, %s1770_s30 }
  0x2b   : > { %s188_s23 = sshll.u32 %s179_s22, 4  ;;  %s2028_s16 = sand.u32 1, %s1649_s14   ;;  %s189_s23 = int_to_ptr.vmem [resolvable:$true] %s188_s23 }
  0x2c   : > { %s176_s26 = scalar_lea.sflag [#allocation6], %s2028_s16  ;;  %s1534_s8 = scalar_lea.vmem %s189_s23, 512 }
  0x2d   : > { %p1535_p12 = scmp.ne.s32.totalorder %s189_s23, %s1534_s8  ;;  %s1666_s10 = smov [#allocation5]  }
  0x2e   : > { %s1539_s6 = sshll.u32 %s1666_s10, 4  ;;  %s1540_s6 = int_to_ptr.vmem [resolvable:$false] %s1539_s6 }
  0x2f   : > { %p1537_p1 = pnand %p1535_p12, %p1495_p3  ;;  %s1541_s9 = scalar_lea.vmem %s1540_s6, 1024 }
  0x30   : > { %p1542_p5 = scmp.lt.s32.totalorder %s189_s23, %s1540_s6  ;;  %p1543_p6 = scmp.lt.s32.totalorder %s1541_s9, %s1534_s8 }
  0x31   : > { %p1538_p2 = pneg %p1537_p1 }
  0x32   : > { %p1544_p7 = por %p1543_p6, %p1542_p5 }
  0x34   : > { %p1545_p10 = pnand %p1544_p7, %p1538_p2 }
  0x36   : > { %1548 = shalt.err (!%p1545_p10)
}
  0x37   : > { %s2029_s1 = smov 128   ;;  %s226_s16 = scalar_lea.vmem [#allocation10], %s1767_s29 }
  0x38   : > { %1397 = dma.hbm_to_vmem [thread:$0]  (!%p1774_p0), %s187_s21, 512, %s189_s23, %s176_s26, %s2029_s1, %s2029_s1, %s1665_s5  }
  0x39   : > { %s236_s28 = sshll.u32 %s226_s16, 4  ;;  %s1667_s6 = smov [#allocation10]   ;;  %s237_s28 = int_to_ptr.vmem [resolvable:$true] %s236_s28 }
  0x3a   : > { %s1562_s19 = scalar_lea.vmem %s237_s28, 512  ;;  %s1567_s22 = sshll.u32 %s1667_s6, 4  ;;  %s1568_s22 = int_to_ptr.vmem [resolvable:$false] %s1567_s22 }
  0x3b   : > { %p1563_p13 = scmp.ne.s32.totalorder %s237_s28, %s1562_s19  ;;  %s1569_s8 = scalar_lea.vmem %s1568_s22, 1024 }
  0x3c   : > { %p1570_p2 = scmp.lt.s32.totalorder %s237_s28, %s1568_s22  ;;  %p1571_p5 = scmp.lt.s32.totalorder %s1569_s8, %s1562_s19 }
  0x3d   : > { %p1565_p12 = pnand %p1563_p13, %p1495_p3 }
  0x3e   : > { %p1572_p6 = por %p1571_p5, %p1570_p2 }
  0x3f   : > { %p1566_p1 = pneg %p1565_p12 }
  0x41   : > { %p1573_p7 = pnand %p1572_p6, %p1566_p1 }
  0x43   : > { %1576 = shalt.err (!%p1573_p7)
}
  0x44   : > { %1403 = dma.hbm_to_vmem [thread:$0]  (!%p1774_p0), %s235_s20, 512, %s237_s28, %s1786_s11, %s2029_s1, %s2029_s1, %s1665_s5  }
  0x45   : > { %248 = sbr.rel (%p1803_p4) target bundleno = 996 (0x3e4), region = 32  ;;  %s1844_s21 = sand.u32 (!%p1803_p4), 1, %s1645_s13  }
  0x46   : > { %s1847_s4 = sshll.u32 (!%p1803_p4), %s1844_s21, 5  ;;  %s251_s23 = scalar_lea.sflag (!%p1803_p4), [#allocation6], %s1844_s21 }
  0x47   : > { %s1851_s10 = scalar_lea.vmem (!%p1803_p4), [#allocation5], %s1847_s4 }
  0x4a   : > { %1628 = dma.done.wait (%p1747_p8), %s251_s23, 512  }
  0x4b   : > { %1630 = vsyncadd (%p1747_p8), %s251_s23, 4294966784  ;;  %s259_s20 = sand.u32 1, %s1727_s18   ;;  %s263_s11 = scalar_lea.vmem [#allocation8], %s1847_s4 }
  0x4c   : > { %s260_s30 = scalar_lea.sflag [#allocation9], %s259_s20 }
  0x4d   : > { %1632 = dma.done.wait (%p1747_p8), %s260_s30, 1024  }
  0x4e   : > { %1634 = vsyncadd (%p1747_p8), %s260_s30, 4294966272  ;;  %vm321_vm0 = vcmask 261120   ;;  %v1668_v0 = vmov 0.0   ;;  %vm1669_vm1 = vmmov 0   ;;  %v330_v1 = vld [vmem:[%s263_s11] sm:$0xff]  ;;  %v331_v2 = vld [vmem:[%s263_s11 + $0x8] sm:$0xff] }
  0x4f   : > { %1346 = vmatprep.subr.mxu0 %v1668_v0  ;;  %322 = vst.msk [vmem:[#allocation4] sm:$0xff] %vm321_vm0, %v1668_v0  ;;  %323 = vst.msk [vmem:[#allocation4 + $0x8] sm:$0xff] %vm321_vm0, %v1668_v0  ;;  %1351 = vmatprep.subr.mxu1 %v1668_v0  ;;  %v326_v3 = vld [vmem:[%s1851_s10] sm:$0xff]  ;;  %v327_v5 = vld [vmem:[%s1851_s10 + $0x8] sm:$0xff]  ;;  %vm312_vm2 = vcmask 7168   ;;  %v1670_v13 = vmov -inf  }
  0x50   : > { %324 = vst.msk [vmem:[#allocation4 + $0x10] sm:$0xff] %vm321_vm0, %v1668_v0  ;;  %325 = vst.msk [vmem:[#allocation4 + $0x18] sm:$0xff] %vm321_vm0, %v1668_v0  ;;  %1348 = vmatprep.mubr.msk.f32.mxu0 %vm1669_vm1, %v1668_v0  ;;  %1353 = vmatprep.mubr.msk.f32.mxu1 %vm1669_vm1, %v1668_v0  ;;  %v338_v4 = vmul.f32 0.17677669, %v326_v3  ;;  %v328_v6 = vld [vmem:[%s1851_s10 + $0x10] sm:$0xff]  ;;  %v329_v9 = vld [vmem:[%s1851_s10 + $0x18] sm:$0xff] }
  0x51   : > { %1347 = vmatpush3.xpose.msk.msra.mxu0 %vm321_vm0, %v330_v1  ;;  %1352 = vmatpush3.xpose.msk.msra.mxu1 %vm321_vm0, %v331_v2  ;;  %v339_v7 = vmul.f32 0.17677669, %v327_v5  ;;  %v332_v8 = vld [vmem:[%s263_s11 + $0x10] sm:$0xff]  ;;  %v333_v10 = vld [vmem:[%s263_s11 + $0x18] sm:$0xff]  ;;  %v340_v11 = vmul.f32 0.17677669, %v328_v6 }
  0x52   : > { %1356 = vmatprep.subr.mxu0 %v1668_v0  ;;  %1361 = vmatprep.subr.mxu1 %v1668_v0  ;;  %v341_v12 = vmul.f32 0.17677669, %v329_v9  ;;  %313 = vst.msk [vmem:[#allocation2] sm:$0xff] %vm312_vm2, %v1670_v13  ;;  %314 = vst.msk [vmem:[#allocation2 + $0x8] sm:$0xff] %vm312_vm2, %v1670_v13  ;;  %vm651_vm3 = vcmask 64512   ;;  %v1671_v26 = vmov 0  }
  0x53   : > { %315 = vst.msk [vmem:[#allocation2 + $0x10] sm:$0xff] %vm312_vm2, %v1670_v13  ;;  %316 = vst.msk [vmem:[#allocation2 + $0x18] sm:$0xff] %vm312_vm2, %v1670_v13  ;;  %1467 = vset.pattern.permute.xlu0 %v1671_v26  ;;  %1468 = vset.pattern.permute.xlu1 %v1671_v26  ;;  %s272_s18 = scalar_lea.vmem [#allocation10], %s1847_s4  ;;  %s1672_s24 = smov 32   ;;  %vm1137_vm4 = vcmask 523264   ;;  %vm1139_vm5 = vcmask 785408  }
  0x54   : > { %1349 = vmatmul.mubr.msk.f32.vlgmr.msra.gmra.mxu0 %vm321_vm0, %v338_v4  ;;  %1354 = vmatmul.mubr.msk.f32.vlgmr.msra.gmra.mxu1 %vm321_vm0, %v339_v7  ;;  %317 = vst.msk [vmem:[#allocation3] sm:$0xff] %vm312_vm2, %v1668_v0  ;;  %318 = vst.msk [vmem:[#allocation3 + $0x8] sm:$0xff] %vm312_vm2, %v1668_v0  ;;  %v334_v43 = vld [vmem:[%s272_s18] sm:$0xff]  ;;  %v335_v44 = vld [vmem:[%s272_s18 + $0x8] sm:$0xff]  ;;  %s1673_s5 = smov 64   ;;  %s1674_s7 = smov 96  }
  0x55   : > { %1357 = vmatpush3.xpose.msk.msra.mxu0 %vm321_vm0, %v332_v8  ;;  %1358 = vmatprep.mubr.msk.f32.mxu0 %vm1669_vm1, %v1668_v0  ;;  %319 = vst.msk [vmem:[#allocation3 + $0x10] sm:$0xff] %vm312_vm2, %v1668_v0  ;;  %320 = vst.msk [vmem:[#allocation3 + $0x18] sm:$0xff] %vm312_vm2, %v1668_v0  ;;  %v336_v57 = vld [vmem:[%s272_s18 + $0x10] sm:$0xff]  ;;  %v337_v59 = vld [vmem:[%s272_s18 + $0x18] sm:$0xff]  ;;  %s1310_s9 = sshll.u32 %s1844_s21, 3  ;;  %s1324_s1 = sshll.u32 %s1653_s15, 7 }
  0x56   : > { %1362 = vmatpush3.xpose.msk.msra.mxu1 %vm321_vm0, %v333_v10  ;;  %1363 = vmatprep.mubr.msk.f32.mxu1 %vm1669_vm1, %v1668_v0  ;;  %s304_s16 = scalar_lea.vmem [#allocation11], %s1310_s9  ;;  %s1966_s22 = scalar_lea.hbm %s2011_s3, %s1324_s1 }
  0x57   : > { %1366 = vmatprep.subr.mxu0 %v1668_v0  ;;  %1371 = vmatprep.subr.mxu1 %v1668_v0  ;;  %s1157_s28 = sshll.u32 %s304_s16, 4  ;;  %s1143_s8 = scalar_lea.sflag [#allocation7], %s1844_s21  ;;  %s1158_s28 = int_to_ptr.vmem [resolvable:$true] %s1157_s28 }
  0x58   : > { %1359 = vmatmul.mubr.msk.f32.vlgmr.msra.gmra.mxu0 %vm321_vm0, %v340_v11  ;;  %s1577_s26 = scalar_lea.vmem %s1158_s28, 128  ;;  %s1675_s15 = smov [#allocation11]  }
  0x59   : > { %1364 = vmatmul.mubr.msk.f32.vlgmr.msra.gmra.mxu1 %vm321_vm0, %v341_v12  ;;  %1368 = vmatprep.mubr.msk.f32.mxu0 %vm1669_vm1, %v1668_v0  ;;  %v1917_v27 = vld [vmem:[#allocation2] sm:$0xff]  ;;  %v1922_v30 = vld [vmem:[#allocation2 + $0x8] sm:$0xff]  ;;  %p1578_p8 = scmp.ne.s32.totalorder %s1158_s28, %s1577_s26  ;;  %s1581_s29 = sshll.u32 %s1675_s15, 4  ;;  %s1582_s29 = int_to_ptr.vmem [resolvable:$false] %s1581_s29 }
  0x5a   : > { %1373 = vmatprep.mubr.msk.f32.mxu1 %vm1669_vm1, %v1668_v0  ;;  %v649_v31 = vld [vmem:[#allocation2 + $0x10] sm:$0xff]  ;;  %v650_v37 = vld [vmem:[#allocation2 + $0x18] sm:$0xff]  ;;  %1367 = vmatpush3.msra.mxu0 %v334_v43  ;;  %s1583_s4 = scalar_lea.vmem %s1582_s29, 256  ;;  %p1584_p4 = scmp.lt.s32.totalorder %s1158_s28, %s1582_s29 }
  0x5b   : > { %1376 = vmatprep.subr.mxu0 %v1668_v0  ;;  %1372 = vmatpush3.msra.mxu1 %v335_v44  ;;  %v713_v10 = vld [vmem:[#allocation3 + $0x8] sm:$0xff]  ;;  %p1579_p0 = pnand %p1578_p8, %p1751_p9  ;;  %p1585_p10 = scmp.lt.s32.totalorder %s1583_s4, %s1577_s26 }
  0x5c   : > { %1381 = vmatprep.subr.mxu1 %v1668_v0  ;;  %v714_v13 = vld [vmem:[#allocation3 + $0x10] sm:$0xff] }
  0x5d   : > { %p1580_p3 = pneg %p1579_p0  ;;  %p1586_p13 = por %p1585_p10, %p1584_p4 }
  0x5f   : > { %p1587_p12 = pnand %p1586_p13, %p1580_p3 }
 0x114   : > { %v415_v14 = vpop.f32.mrf.mxu0  ;;  %v491_v15 = vpop.f32.mrf.mxu1 }
 0x115   : > { %v652_v16 = vsel %vm651_vm3, %v415_v14, -inf  ;;  %v655_v19 = vsel %vm651_vm3, %v491_v15, -inf }
 0x116   : > { %653 = vmax.xlane.f32.xlu0 %v652_v16  ;;  %v1350_v17 = vpop.f32.mrf.mxu0  ;;  %v1355_v18 = vpop.f32.mrf.mxu1 }
 0x117   : > { %v715_v17 = vld [vmem:[#allocation3 + $0x18] sm:$0xff] }
 0x118   : > { %v567_v20 = vpop.f32.mrf.mxu0 }
 0x119   : > { %v643_v21 = vpop.f32.mrf.mxu1  ;;  %v658_v22 = vsel %vm651_vm3, %v567_v20, -inf }
 0x11a   : > { %656 = vmax.xlane.f32.xlu0 %v655_v19  ;;  %v1360_v23 = vpop.f32.mrf.mxu0  ;;  %659 = vmax.xlane.f32.xlu1 %v658_v22  ;;  %v661_v25 = vsel %vm651_vm3, %v643_v21, -inf  ;;  %v712_v22 = vld [vmem:[#allocation3] sm:$0xff] }
 0x11b   : > { %v1365_v24 = vpop.f32.mrf.mxu1 }
 0x11e   : > { %662 = vmax.xlane.f32.xlu1 %v661_v25 }
 0x19f   : > { %v654_v28 = vpop.xlane.xlu0 %653 }
 0x1a0   : > { %v1920_v29 = vmax.f32 %v1917_v27, %v654_v28 }
 0x1a2   : > { %v668_v32 = vsub.f32 %v1917_v27, %v1920_v29  ;;  %1069 = vst.msk [vmem:[#allocation2] sm:$0xff] %vm312_vm2, %v1920_v29  ;;  %682 = vperm.xlu0 %1467, %v1920_v29  }
 0x1a3   : > { %v657_v33 = vpop.xlane.xlu0 %656  ;;  %v660_v34 = vpop.xlane.xlu1 %659 }
 0x1a4   : > { %v665_v35 = vmax.f32 %v1922_v30, %v657_v33  ;;  %v666_v36 = vmax.f32 %v649_v31, %v660_v34  ;;  %v672_v9 = vmul.f32 1.442695, %v668_v32 }
 0x1a6   : > { %v669_v38 = vsub.f32 %v1922_v30, %v665_v35  ;;  %1070 = vst.msk [vmem:[#allocation2 + $0x8] sm:$0xff] %vm312_vm2, %v665_v35  ;;  %687 = vperm.xlu1 %1468, %v665_v35   ;;  %v670_v39 = vsub.f32 %v649_v31, %v666_v36  ;;  %1071 = vst.msk [vmem:[#allocation2 + $0x10] sm:$0xff] %vm312_vm2, %v666_v36 }
 0x1a7   : > { %v663_v40 = vpop.xlane.xlu1 %662 }
 0x1a8   : > { %v667_v41 = vmax.f32 %v650_v37, %v663_v40  ;;  %v676_v3 = vmul.f32 1.442695, %v670_v39  ;;  %v674_v4 = vmul.f32 1.442695, %v669_v38 }
 0x1aa   : > { %692 = vperm.xlu1 %1468, %v666_v36   ;;  %v671_v42 = vsub.f32 %v650_v37, %v667_v41  ;;  %1072 = vst.msk [vmem:[#allocation2 + $0x18] sm:$0xff] %vm312_vm2, %v667_v41 }
 0x1ae   : > { %697 = vperm.xlu1 %1468, %v667_v41  }
 0x21d   : > { %v683_v45 = vpop.permute.xlu0 %682 }
 0x21e   : > { %v700_v46 = vsub.f32 %v415_v14, %v683_v45 }
 0x220   : > { %v704_v47 = vmul.f32 1.442695, %v700_v46 }
 0x221   : > { %v688_v48 = vpop.permute.xlu1 %687 }
 0x222   : > { %1469 = vpow2.f32 %v704_v47  ;;  %v701_v49 = vsub.f32 %v491_v15, %v688_v48  ;;  %v742_v47 = vld [vmem:[#allocation4 + $0x8] sm:$0xff] }
 0x224   : > { %v706_v50 = vmul.f32 1.442695, %v701_v49 }
 0x225   : > { %v693_v51 = vpop.permute.xlu1 %692 }
 0x226   : > { %1471 = vpow2.f32 %v706_v50  ;;  %v702_v52 = vsub.f32 %v567_v20, %v693_v51 }
 0x228   : > { %v708_v53 = vmul.f32 1.442695, %v702_v52  ;;  %v743_v52 = vld [vmem:[#allocation4 + $0x10] sm:$0xff] }
 0x229   : > { %v698_v54 = vpop.permute.xlu1 %697 }
 0x22a   : > { %1473 = vpow2.f32 %v708_v53  ;;  %v703_v55 = vsub.f32 %v643_v21, %v698_v54 }
 0x22c   : > { %v710_v56 = vmul.f32 1.442695, %v703_v55 }
 0x22e   : > { %1475 = vpow2.f32 %v710_v56 }
 0x22f   : > { %v1470_v58 = vpop.eup %1469  ;;  %1477 = vpow2.f32 %v676_v3 }
 0x230   : > { %1369 = vmatmul.mubr.msk.f32.vlgmr.msra.gmra.mxu0 %vm651_vm3, %v1470_v58  ;;  %v720_v5 = vsel %vm651_vm3, %v1470_v58, 0.0  ;;  %1479 = vpow2.f32 %v674_v4  ;;  %v744_v58 = vld [vmem:[#allocation4 + $0x18] sm:$0xff] }
 0x231   : > { %1377 = vmatpush3.msra.mxu0 %v336_v57  ;;  %1378 = vmatprep.mubr.msk.f32.mxu0 %vm1669_vm1, %v1668_v0 }
 0x233   : > { %v1472_v60 = vpop.eup %1471 }
 0x234   : > { %1374 = vmatmul.mubr.msk.f32.vlgmr.msra.gmra.mxu1 %vm651_vm3, %v1472_v60  ;;  %v723_v61 = vsel %vm651_vm3, %v1472_v60, 0.0 }
 0x235   : > { %724 = vadd.xlane.f32.xlu1 %v723_v61  ;;  %1382 = vmatpush3.msra.mxu1 %v337_v59 }
 0x236   : > { %1383 = vmatprep.mubr.msk.f32.mxu1 %vm1669_vm1, %v1668_v0  ;;  %v678_v0 = vmul.f32 1.442695, %v671_v42 }
 0x237   : > { %v1474_v62 = vpop.eup %1473 }
 0x238   : > { %1379 = vmatmul.mubr.msk.f32.vlgmr.msra.gmra.mxu0 %vm651_vm3, %v1474_v62  ;;  %v726_v63 = vsel %vm651_vm3, %v1474_v62, 0.0  ;;  %1481 = vpow2.f32 %v678_v0 }
 0x239   : > { %727 = vadd.xlane.f32.xlu0 %v726_v63  ;;  %1483 = vpow2.f32 %v672_v9  ;;  %v741_v9 = vld [vmem:[#allocation4] sm:$0xff] }
 0x23b   : > { %v1476_v1 = vpop.eup %1475 }
 0x23c   : > { %1384 = vmatmul.mubr.msk.f32.vlgmr.msra.gmra.mxu1 %vm651_vm3, %v1476_v1  ;;  %v729_v2 = vsel %vm651_vm3, %v1476_v1, 0.0  ;;  %v1478_v6 = vpop.eup %1477 }
 0x23d   : > { %730 = vadd.xlane.f32.xlu1 %v729_v2  ;;  %v1480_v7 = vpop.eup %1479  ;;  %v718_v15 = vmul.f32 %v1478_v6, %v714_v13 }
 0x23e   : > { %v717_v11 = vmul.f32 %v1480_v7, %v713_v10 }
 0x241   : > { %721 = vadd.xlane.f32.xlu1 %v720_v5 }
 0x245   : > { %v1482_v8 = vpop.eup %1481 }
 0x246   : > { %v719_v19 = vmul.f32 %v1482_v8, %v715_v17  ;;  %v1484_v20 = vpop.eup %1483 }
 0x247   : > { %v716_v25 = vmul.f32 %v1484_v20, %v712_v22 }
 0x24f   : > { %757 = vperm.xlu0 %1467, %v1478_v6  }
 0x252   : > { %752 = vperm.xlu1 %1468, %v1480_v7  }
 0x256   : > { %762 = vperm.xlu1 %1468, %v1482_v8  }
 0x2be   : > { %v725_v12 = vpop.xlane.xlu1 %724 }
 0x2bf   : > { %v733_v14 = vadd.f32 %v725_v12, %v717_v11 }
 0x2c1   : > { %738 = vst.msk [vmem:[#allocation3 + $0x8] sm:$0xff] %vm312_vm2, %v733_v14 }
 0x2c2   : > { %v728_v16 = vpop.xlane.xlu0 %727 }
 0x2c3   : > { %v734_v18 = vadd.f32 %v728_v16, %v718_v15 }
 0x2c5   : > { %739 = vst.msk [vmem:[#allocation3 + $0x10] sm:$0xff] %vm312_vm2, %v734_v18 }
 0x2c6   : > { %v731_v21 = vpop.xlane.xlu1 %730 }
 0x2c7   : > { %v735_v23 = vadd.f32 %v731_v21, %v719_v19 }
 0x2c8   : > { %v1077_v24 = vld [vmem:[#allocation3 + $0x8] sm:$0xff] }
 0x2c9   : > { %740 = vst.msk [vmem:[#allocation3 + $0x18] sm:$0xff] %vm312_vm2, %v735_v23  ;;  %1485 = vrcp.f32 %v1077_v24 }
 0x2ca   : > { %v722_v26 = vpop.xlane.xlu1 %721  ;;  %v758_v53 = vpop.permute.xlu0 %757 }
 0x2cb   : > { %v732_v27 = vadd.f32 %v722_v26, %v716_v25  ;;  %v767_v57 = vmul.f32 %v758_v53, %v743_v52 }
 0x2cc   : > { %v1078_v28 = vld [vmem:[#allocation3 + $0x10] sm:$0xff] }
 0x2cd   : > { %737 = vst.msk [vmem:[#allocation3] sm:$0xff] %vm312_vm2, %v732_v27  ;;  %1487 = vrcp.f32 %v1078_v28 }
 0x2ce   : > { %v753_v48 = vpop.permute.xlu1 %752 }
 0x2cf   : > { %v766_v51 = vmul.f32 %v753_v48, %v742_v47 }
 0x2d0   : > { %v1079_v29 = vld [vmem:[#allocation3 + $0x18] sm:$0xff] }
 0x2d1   : > { %1489 = vrcp.f32 %v1079_v29 }
 0x2d2   : > { %v763_v59 = vpop.permute.xlu1 %762 }
 0x2d3   : > { %v768_v63 = vmul.f32 %v763_v59, %v744_v58 }
 0x2d4   : > { %v1076_v30 = vld [vmem:[#allocation3] sm:$0xff] }
 0x2d5   : > { %1491 = vrcp.f32 %v1076_v30 }
 0x2d6   : > { %v1486_v31 = vpop.eup %1485 }
 0x2d7   : > { %v1085_v32 = vmul.f32 %v1486_v31, %v1077_v24 }
 0x2d9   : > { %v1089_v33 = vsub.f32 2.0, %v1085_v32 }
 0x2da   : > { %v1488_v34 = vpop.eup %1487 }
 0x2db   : > { %v1093_v35 = vmul.f32 %v1486_v31, %v1089_v33  ;;  %v1086_v36 = vmul.f32 %v1488_v34, %v1078_v28 }
 0x2dd   : > { %1107 = vperm.xlu1 %1468, %v1093_v35   ;;  %v1090_v37 = vsub.f32 2.0, %v1086_v36 }
 0x2de   : > { %v1490_v38 = vpop.eup %1489 }
 0x2df   : > { %v1094_v39 = vmul.f32 %v1488_v34, %v1090_v37  ;;  %v1087_v40 = vmul.f32 %v1490_v38, %v1079_v29 }
 0x2e1   : > { %1112 = vperm.xlu1 %1468, %v1094_v39   ;;  %v1091_v41 = vsub.f32 2.0, %v1087_v40 }
 0x2e2   : > { %v1492_v42 = vpop.eup %1491 }
 0x2e3   : > { %v1095_v43 = vmul.f32 %v1490_v38, %v1091_v41  ;;  %v1084_v44 = vmul.f32 %v1492_v42, %v1076_v30 }
 0x2e5   : > { %1117 = vperm.xlu0 %1467, %v1095_v43   ;;  %747 = vperm.xlu1 %1468, %v1484_v20   ;;  %v1088_v45 = vsub.f32 2.0, %v1084_v44 }
 0x2e7   : > { %v1092_v46 = vmul.f32 %v1492_v42, %v1088_v45 }
 0x2e9   : > { %1102 = vperm.xlu0 %1467, %v1092_v46  }
 0x2f0   : > { %v838_v49 = vpop.f32.mrf.mxu0 }
 0x2f2   : > { %v1370_v50 = vpop.f32.mrf.mxu0 }
 0x2f4   : > { %v911_v54 = vpop.f32.mrf.mxu1 }
 0x2f5   : > { %v1062_v55 = vadd.f32 %v911_v54, %v766_v51 }
 0x2f6   : > { %v1375_v56 = vpop.f32.mrf.mxu1 }
 0x2f7   : > { %1066 = vst.msk [vmem:[#allocation4 + $0x8] sm:$0xff] %vm321_vm0, %v1062_v55 }
 0x2f8   : > { %v984_v60 = vpop.f32.mrf.mxu0 }
 0x2f9   : > { %v1063_v61 = vadd.f32 %v984_v60, %v767_v57 }
 0x2fa   : > { %v1380_v62 = vpop.f32.mrf.mxu0 }
 0x2fb   : > { %1067 = vst.msk [vmem:[#allocation4 + $0x10] sm:$0xff] %vm321_vm0, %v1063_v61 }
 0x2fc   : > { %v1057_v1 = vpop.f32.mrf.mxu1 }
 0x2fd   : > { %v1064_v2 = vadd.f32 %v1057_v1, %v768_v63 }
 0x2fe   : > { %v1385_v3 = vpop.f32.mrf.mxu1  ;;  %v1097_v4 = vld [vmem:[#allocation4 + $0x8] sm:$0xff] }
 0x2ff   : > { %1068 = vst.msk [vmem:[#allocation4 + $0x18] sm:$0xff] %vm321_vm0, %v1064_v2 }
 0x302   : > { %v1098_v7 = vld [vmem:[#allocation4 + $0x10] sm:$0xff] }
 0x306   : > { %v1099_v10 = vld [vmem:[#allocation4 + $0x18] sm:$0xff] }
 0x358   : > { %v1108_v5 = vpop.permute.xlu1 %1107 }
 0x359   : > { %v1121_v0 = vmul.f32 %v1108_v5, %v1097_v4 }
 0x35b   : > { %1125 = vrot.lane.b32.xlu1 %v1121_v0, %s1672_s24 }
 0x35c   : > { %v1113_v6 = vpop.permute.xlu1 %1112 }
 0x35d   : > { %v1122_v8 = vmul.f32 %v1113_v6, %v1098_v7 }
 0x35f   : > { %1129 = vrot.lane.b32.xlu0 %v1122_v8, %s1673_s5 }
 0x360   : > { %v1118_v11 = vpop.permute.xlu0 %1117  ;;  %v748_v12 = vpop.permute.xlu1 %747 }
 0x361   : > { %v1123_v13 = vmul.f32 %v1118_v11, %v1099_v10  ;;  %v765_v14 = vmul.f32 %v748_v12, %v741_v9 }
 0x363   : > { %v1061_v15 = vadd.f32 %v838_v49, %v765_v14  ;;  %1133 = vrot.lane.b32.xlu1 %v1123_v13, %s1674_s7 }
 0x364   : > { %v1103_v16 = vpop.permute.xlu0 %1102 }
 0x365   : > { %1065 = vst.msk [vmem:[#allocation4] sm:$0xff] %vm321_vm0, %v1061_v15 }
 0x36c   : > { %v1096_v17 = vld [vmem:[#allocation4] sm:$0xff] }
 0x36d   : > { %v1120_v19 = vmul.f32 %v1103_v16, %v1096_v17 }
 0x3cd   : > { %v1126_v18 = vpop.permute.xlu1 %1125 }
 0x3ce   : > { %v1136_v21 = vsel %vm321_vm0, %v1120_v19, %v1126_v18 }
 0x3d1   : > { %v1130_v20 = vpop.permute.xlu0 %1129 }
 0x3d2   : > { %v1138_v22 = vsel %vm1137_vm4, %v1136_v21, %v1130_v20 }
 0x3d5   : > { %v1134_v23 = vpop.permute.xlu1 %1133 }
 0x3d6   : > { %v1140_v24 = vsel %vm1139_vm5, %v1138_v22, %v1134_v23 }
 0x3d7   : > { %1141 = vst [vmem:[%s304_s16] sm:$0xff] %v1140_v24 }
 0x3d8   : > { %1590 = shalt.err (!%p1587_p12)
}
 0x3d9   : > { %s1591_s23 = scalar_lea.hbm %s1966_s22, 128  ;;  %s1595_s20 = scalar_lea.hbm %s2011_s3, 256 }
 0x3da   : > { %p1592_p1 = scmp.ne.s32.totalorder %s1966_s22, %s1591_s23  ;;  %p1596_p6 = scmp.lt.s32.totalorder %s1966_s22, %s2011_s3 }
 0x3db   : > { %p1597_p7 = scmp.lt.s32.totalorder %s1595_s20, %s1591_s23 }
 0x3dc   : > { %p1593_p2 = pnand %p1592_p1, %p1751_p9 }
 0x3dd   : > { %p1598_p8 = por %p1597_p7, %p1596_p6 }
 0x3de   : > { %p1594_p5 = pneg %p1593_p2 }
 0x3e0   : > { %p1599_p0 = pnand %p1598_p8, %p1594_p5 }
 0x3e2   : > { %1602 = shalt.err (!%p1599_p0)
}
 0x3e3   : > { %1392 = dma.vmem_to_hbm [thread:$0]  (%p1751_p9), %s1158_s28, 128, %s1966_s22, %s1143_s8  }
 0x3e4 PF: > { %s1169_s18 = sand.u32 1, %s1641_s12   ;;  %p2030_p3 = scmp.ge.s32.totalorder %s1661_s17, 2 }
 0x3e5   : > { %s1170_s24 = scalar_lea.sflag [#allocation7], %s1169_s18 }
 0x3e6   : > { %p1405_p4 = pnand %p2030_p3, %p1758_p11 }
 0x3e8   : > { %p1406_p10 = pneg %p1405_p4 }
 0x3ea   : > { %1636 = dma.done.wait (%p1406_p10), %s1170_s24, 128  }
 0x3eb   : > { %1638 = vsyncadd (%p1406_p10), %s1170_s24, 4294967168  ;;  %s22_s17 = sadd.s32 1, %s1661_s17   ;;  %s2031_s25 = sld [smem:[#allocation17_spill]] }
 0x3ec   : > { %p19_p13 = scmp.ge.s32.totalorder %s22_s17, 4   ;;  %s2032_s15 = sld [smem:[#allocation15_spill]] }
 0x3ed   : > { %s2033_s16 = sld [smem:[#allocation16_spill]]  ;;  %s2034_s12 = smov %s1645_s13 }
 0x3ee   : > { %s2035_s13 = smov %s1649_s14  ;;  %21 = sbr.rel (!%p19_p13) target bundleno = 10 (0xa), region = 109 }
 0x3f1   : > { %s2036_s14 = smov %s2031_s25 }
 0x3f3   :  { %1175 = vsyncpa [#allocation6], 1 }
 0x3f4   :  { %1177 = vsyncpa [#allocation6 + $0x1], 1 }
 0x3f5   :  { %1178 = vsyncpa [#allocation9], 1 }
 0x3f6   :  { %1180 = vsyncpa [#allocation9 + $0x1], 1 }
 0x3f7   :  { %1181 = vsyncpa [#allocation7], 1 }
 0x3f8   :  { %1183 = vsyncpa [#allocation7 + $0x1], 1 }

</bundles_post_ra>
